<compile_context>
chip_gen: v5e
topology: v5e:2x2
jax: 0.10.0
libtpu: 0.0.40
codegen_flags: <defaults>
</compile_context>

<pallas_src>
import functools

import jax
import jax.numpy as jnp
from jax import lax
from jax.experimental import pallas as pl
from jax.experimental.pallas import tpu as pltpu


def _embed_kernel(tok_ref, pos_ref, emb_ref, pe_ref, *rest,
                  tile, drop_prob, use_dropout):
    if use_dropout:
        bits_ref, out_ref = rest
    else:
        (out_ref,) = rest

    base = pl.program_id(0) * tile

    # ---- Phase 1: row gather. out[t, :] = emb[tok[t], :] + pe[pos[t], :] ----
    # Token ids / positions come from SMEM (scalar prefetch); embedding and PE
    # tables are resident in VMEM.  Dynamic sublane-dim slices only.
    def gather_row(t, carry):
        tok = tok_ref[base + t]
        pos = pos_ref[base + t]
        row = emb_ref[pl.ds(tok, 1), :] + pe_ref[pl.ds(pos, 1), :]   # (1, D)
        out_ref[pl.ds(t, 1), :] = row
        return carry

    lax.fori_loop(0, tile, gather_row, 0)

    # ---- Phase 2: vectorized inverted dropout over the whole (tile, D) block.
    if use_dropout:
        # bits are uniform in [0, 2^31); keep iff bits >= p * 2^31.
        thr = min(int(drop_prob * 2147483648.0), 2147483647)
        keep = bits_ref[...] >= jnp.int32(thr)
        scale = jnp.float32(1.0 / (1.0 - drop_prob))
        out_ref[...] = jnp.where(keep, out_ref[...] * scale, jnp.float32(0.0))


def transformer_embedding(tokens, emb_table, pos_encoding, *,
                          drop_prob=0.0, rng_key=None, tile=256):
    """tokens: (B, S) int; emb_table: (V, D) f32; pos_encoding: (max_len, D) f32."""
    B, S = tokens.shape
    V, D = emb_table.shape
    N = B * S

    tile = max(8, (int(tile) + 7) // 8 * 8)          # sublane-aligned tile
    n_tiles = pl.cdiv(N, tile)
    n_pad = n_tiles * tile

    tok_flat = jnp.pad(tokens.reshape(-1).astype(jnp.int32), (0, n_pad - N))
    pos_flat = jnp.arange(n_pad, dtype=jnp.int32) % S
    pe = pos_encoding[:S].astype(jnp.float32)        # PositionalEncoding.forward slice

    use_dropout = float(drop_prob) > 0.0

    in_specs = [
        pl.BlockSpec((V, D), lambda i, *_: (0, 0)),  # embedding table (VMEM resident)
        pl.BlockSpec((S, D), lambda i, *_: (0, 0)),  # positional-encoding slab
    ]
    operands = [emb_table.astype(jnp.float32), pe]

    if use_dropout:
        if rng_key is None:
            rng_key = jax.random.PRNGKey(0)
        bits = jax.random.bits(rng_key, (n_pad, D), dtype=jnp.uint32)
        bits = (bits >> 1).astype(jnp.int32)         # uniform in [0, 2^31)
        in_specs.append(pl.BlockSpec((tile, D), lambda i, *_: (i, 0)))
        operands.append(bits)

    kernel = functools.partial(_embed_kernel, tile=tile,
                               drop_prob=float(drop_prob),
                               use_dropout=use_dropout)

    out = pl.pallas_call(
        kernel,
        out_shape=jax.ShapeDtypeStruct((n_pad, D), jnp.float32),
        grid_spec=pltpu.PrefetchScalarGridSpec(
            num_scalar_prefetch=2,                   # token ids + positions -> SMEM
            grid=(n_tiles,),
            in_specs=in_specs,
            out_specs=pl.BlockSpec((tile, D), lambda i, *_: (i, 0)),
        ),
        compiler_params=pltpu.CompilerParams(
            dimension_semantics=("parallel",)),      # shard tiles across v7x's 2 TCs
    )(tok_flat, pos_flat, *operands)

    return out[:N].reshape(B, S, D)


def make_sinusoidal_encoding(max_len, d_model):
    pos = jnp.arange(max_len, dtype=jnp.float32)[:, None]
    two_i = jnp.arange(0, d_model, 2, dtype=jnp.float32)
    angle = pos / jnp.power(10000.0, two_i / d_model)
    pe = jnp.zeros((max_len, d_model), jnp.float32)
    pe = pe.at[:, 0::2].set(jnp.sin(angle))
    pe = pe.at[:, 1::2].set(jnp.cos(angle))
    return pe


if __name__ == "__main__":
    # Small, deterministic setup consistent with the module's forward pass.
    vocab_size, d_model, max_len = 128, 256, 64
    B, S = 2, 32
    drop_prob = 0.1

    key = jax.random.PRNGKey(0)
    k_emb, k_tok, k_drop = jax.random.split(key, 3)

    # TokenEmbedding ~ nn.Embedding(vocab_size, d_model, padding_idx=1)
    emb_table = jax.random.normal(k_emb, (vocab_size, d_model), jnp.float32) * 0.02
    emb_table = emb_table.at[1].set(0.0)             # padding_idx=1 row is zero

    pos_encoding = make_sinusoidal_encoding(max_len, d_model)
    tokens = jax.random.randint(k_tok, (B, S), 0, vocab_size, dtype=jnp.int32)

    # 1) Eval-mode (dropout disabled) vs pure-JAX reference.
    out_eval = transformer_embedding(tokens, emb_table, pos_encoding, drop_prob=0.0)
    out_eval = jax.block_until_ready(out_eval)
    ref = emb_table[tokens] + pos_encoding[:S][None]
    assert out_eval.shape == (B, S, d_model)
    assert jnp.allclose(out_eval, ref, atol=1e-5, rtol=1e-5), "mismatch vs reference"

    # 2) Train-mode inverted dropout (runtime rng key, no recompile per seed).
    out_train = transformer_embedding(tokens, emb_table, pos_encoding,
                                      drop_prob=drop_prob, rng_key=k_drop)
    out_train = jax.block_until_ready(out_train)
    assert out_train.shape == (B, S, d_model)
    assert bool(jnp.all(jnp.isfinite(out_train)))

    # Kept elements are exactly eval / (1 - p); dropped elements are exactly 0.
    scale = 1.0 / (1.0 - drop_prob)
    kept = out_train != 0.0
    assert jnp.allclose(jnp.where(kept, out_train, 0.0),
                        jnp.where(kept, out_eval * scale, 0.0),
                        atol=1e-5, rtol=1e-5)
    drop_frac = 1.0 - float(jnp.mean(kept.astype(jnp.float32)))
    assert 0.03 < drop_frac < 0.2, f"unexpected drop fraction {drop_frac}"

    print("KERNEL_OK")
</pallas_src>

<mosaic_0001>
module attributes {stable_mosaic.version = 11 : i64} {
  func.func @_embed_kernel(%arg0: i32, %arg1: memref<256xi32, #tpu.memory_space<smem>>, %arg2: memref<256xi32, #tpu.memory_space<smem>>, %arg3: memref<128x256xf32, #tpu.memory_space<vmem>>, %arg4: memref<32x256xf32, #tpu.memory_space<vmem>>, %arg5: memref<256x256xf32, #tpu.memory_space<vmem>>) attributes {dimension_semantics = [#tpu.dimension_semantics<parallel>], iteration_bounds = array<i64: 1>, scalar_prefetch = 2 : i64, scratch_operands = 0 : i64, tpu.core_type = #tpu.core_type<tc>, window_params = [{pipeline_mode = #tpu.pipeline_mode<synchronous>, transform_indices = @transform_0, window_bounds = array<i64: 128, 256>}, {pipeline_mode = #tpu.pipeline_mode<synchronous>, transform_indices = @transform_1, window_bounds = array<i64: 32, 256>}, {transform_indices = @transform_2, window_bounds = array<i64: 256, 256>}]} {
    %c256_i32 = arith.constant 256 : i32
    %0 = arith.muli %arg0, %c256_i32 : i32
    %c0_i32 = arith.constant 0 : i32
    %c256_i32_0 = arith.constant 256 : i32
    %1 = arith.addi %c0_i32, %c256_i32_0 : i32
    %c1_i32 = arith.constant 1 : i32
    scf.for %arg6 = %c0_i32 to %1 step %c1_i32  : i32 {
      %2 = arith.addi %0, %arg6 : i32
      %3 = arith.index_cast %2 : i32 to index
      %4 = memref.load %arg1[%3] : memref<256xi32, #tpu.memory_space<smem>>
      %5 = arith.addi %0, %arg6 : i32
      %6 = arith.index_cast %5 : i32 to index
      %7 = memref.load %arg2[%6] : memref<256xi32, #tpu.memory_space<smem>>
      %8 = arith.index_cast %4 : i32 to index
      %c0 = arith.constant 0 : index
      %9 = vector.load %arg3[%8, %c0] : memref<128x256xf32, #tpu.memory_space<vmem>>, vector<1x256xf32>
      %10 = arith.index_cast %7 : i32 to index
      %c0_2 = arith.constant 0 : index
      %11 = vector.load %arg4[%10, %c0_2] : memref<32x256xf32, #tpu.memory_space<vmem>>, vector<1x256xf32>
      %12 = arith.addf %9, %11 : vector<1x256xf32>
      %13 = arith.index_cast %arg6 : i32 to index
      %c0_3 = arith.constant 0 : index
      %14 = vector.load %arg5[%13, %c0_3] : memref<256x256xf32, #tpu.memory_space<vmem>>, vector<1x256xf32>
      tpu.vector_store %arg5[%13, %c0_3], %12 {strides = array<i32>} : memref<256x256xf32, #tpu.memory_space<vmem>>, vector<1x256xf32>,
    }
    %c256_i32_1 = arith.constant 256 : i32
    return
  }
  func.func @transform_0(%arg0: i32, %arg1: memref<256xi32, #tpu.memory_space<smem>>, %arg2: memref<256xi32, #tpu.memory_space<smem>>) -> (i32, i32) {
    %c0_i32 = arith.constant 0 : i32
    %c0_i32_0 = arith.constant 0 : i32
    %c0_i32_1 = arith.constant 0 : i32
    return %c0_i32, %c0_i32_0 : i32, i32
  }
  func.func @transform_1(%arg0: i32, %arg1: memref<256xi32, #tpu.memory_space<smem>>, %arg2: memref<256xi32, #tpu.memory_space<smem>>) -> (i32, i32) {
    %c0_i32 = arith.constant 0 : i32
    %c0_i32_0 = arith.constant 0 : i32
    %c0_i32_1 = arith.constant 0 : i32
    return %c0_i32, %c0_i32_0 : i32, i32
  }
  func.func @transform_2(%arg0: i32, %arg1: memref<256xi32, #tpu.memory_space<smem>>, %arg2: memref<256xi32, #tpu.memory_space<smem>>) -> (i32, i32) {
    %c0_i32 = arith.constant 0 : i32
    %c0_i32_0 = arith.constant 0 : i32
    return %arg0, %c0_i32 : i32, i32
  }
}

</mosaic_0001>

<bundles_post_ra>
// kernel: tpu_custom_call.1
= control target key start
LH: loop header
LB: loop body
LE: loop exit
PB: predicated region body
PF: predicated region fallthrough
CT: control target
= control target key end

     0   :  { %s272_s21 = smov [#allocation3]   ;;  %s273_s22 = smov [#allocation4]   ;;  %s333_s0 = inlined_call_operand.hbm [shape: s32[256], index: 0, kind: input, shape index: {}]   ;;  %s334_s2 = inlined_call_operand.hbm [shape: f32[128,256], index: 2, kind: input, shape index: {}]   ;;  %s335_s3 = inlined_call_operand.hbm [shape: f32[32,256], index: 3, kind: input, shape index: {}]   ;;  %s336_s4 = inlined_call_operand.hbm [shape: f32[256,256], index: 4, kind: output, shape index: {}]   ;;  %s337_s1 = inlined_call_operand.hbm [shape: s32[256], index: 1, kind: input, shape index: {}]  }
   0x1   :  { %s10_s17 = sshll.u32 %s333_s0, 4  ;;  %s15_s20 = sshll.u32 %s337_s1, 4  ;;  %s11_s17 = int_to_ptr.hbm [resolvable:$true] %s10_s17  ;;  %s16_s20 = int_to_ptr.hbm [resolvable:$true] %s15_s20 }
   0x2   :  { %13 = dma.hbm_to_smem %s11_s17, 32, %s272_s21, [#allocation2] }
   0x3   :  { %18 = dma.hbm_to_smem %s16_s20, 32, %s273_s22, [#allocation2] }
   0x4   :  { %260 = dma.done.wait [#allocation2], 64 }
   0x5   :  { %261 = vsyncadd [#allocation2], 4294967232 }
   0x6   :  { %21 = sfence }
   0x7   :  { %22 = vsyncpa [#allocation6], 0 }
   0x8   :  { %23 = vsyncpa [#allocation9], 0 }
   0x9   :  { %24 = vsyncpa [#allocation7], 0  ;;  %s29_s0 = sshll.u32 %s334_s2, 4  ;;  %s274_s25 = smov [#allocation5]   ;;  %s30_s0 = int_to_ptr.hbm [resolvable:$true] %s29_s0 }
   0xa   :  { %s31_s26 = sshll.u32 %s274_s25, 4  ;;  %s42_s28 = sshll.u32 %s335_s3, 4  ;;  %s32_s26 = int_to_ptr.vmem [resolvable:$true] %s31_s26  ;;  %s43_s28 = int_to_ptr.hbm [resolvable:$true] %s42_s28 }
   0xb   :  { %s275_s29 = smov 256   ;;  %s276_s30 = smov 16  }
   0xc   :  { %37 = dma.hbm_to_vmem [thread:$0]  %s30_s0, 4096, %s32_s26, [#allocation6], %s275_s29, %s275_s29, %s276_s30  }
   0xd   :  { %s277_s5 = smov [#allocation8]  }
   0xe   :  { %s44_s6 = sshll.u32 %s277_s5, 4  ;;  %s45_s6 = int_to_ptr.vmem [resolvable:$true] %s44_s6 }
   0xf   :  { %50 = dma.hbm_to_vmem [thread:$0]  %s43_s28, 1024, %s45_s6, [#allocation9], %s275_s29, %s275_s29, %s276_s30  }
  0x10   :  { %262 = dma.done.wait [#allocation6], 4096  }
  0x11   :  { %263 = vsyncadd [#allocation6], 4294963200 }
  0x12   :  { %264 = dma.done.wait [#allocation9], 1024  }
  0x13   :  { %265 = vsyncadd [#allocation9], 4294966272  ;;  %s322_s2 = smov 0  }
  0x14 LB: > { %s67_s3 = sld [smem:[#allocation3 + %s270_s2]]  ;;  %s92_s7 = sshra.s32 %s270_s2, 3  ;;  %v88_v0 = vlaneseq  ;;  %s270_s2 = sphi %s322_s2, %s65_s2  }
  0x15   : > { %s68_s8 = sld [smem:[#allocation4 + %s270_s2]]  ;;  %s95_s9 = sand.u32 7, %s270_s2 }
  0x16   : > { %s144_s10 = sshll.u32 %s92_s7, 4  ;;  %vm90_vm0 = vcmp.lt.s32.totalorder %v88_v0, 256  ;;  %s65_s2 = sadd.s32 1, %s270_s2  }
  0x17   : > { %s98_s11 = sadd.s32 %s144_s10, %s95_s9  ;;  %p62_p0 = scmp.ge.s32.totalorder %s65_s2, 256  }
  0x18   : > { %s99_s22 = scalar_lea.vmem [#allocation10], %s98_s11  ;;  %s108_s0 = sshll.u32 (%p62_p0), %s336_s4, 4  ;;  %s109_s0 = int_to_ptr.hbm [resolvable:$true] %s108_s0 }
  0x19   :  { %s278_s25 = smov (%p62_p0), [#allocation10]  }
  0x1a   : > { %s69_s12 = sshra.s32 %s67_s3, 3  ;;  %s72_s13 = sand.u32 7, %s67_s3 }
  0x1b   : > { %s142_s14 = sshll.u32 %s69_s12, 4  ;;  %s78_s15 = sshra.s32 %s68_s8, 3 }
  0x1c   : > { %s75_s16 = sadd.s32 %s142_s14, %s72_s13  ;;  %s81_s17 = sand.u32 7, %s68_s8 }
  0x1d   : > { %s143_s18 = sshll.u32 %s78_s15, 4  ;;  %s76_s19 = scalar_lea.vmem [#allocation5], %s75_s16 }
  0x1e   : > { %v77_v1 = vld [vmem:[%s76_s19] ss:$8 sm:$0x3]  ;;  %s84_s20 = sadd.s32 %s143_s18, %s81_s17  ;;  %s106_s26 = sshll.u32 (%p62_p0), %s278_s25, 4  ;;  %s107_s26 = int_to_ptr.vmem [resolvable:$true] %s106_s26 }
  0x1f   : > { %s85_s21 = scalar_lea.vmem [#allocation8], %s84_s20  ;;  %64 = sbr.rel (!%p62_p0) target bundleno = 20 (0x14), region = 46 }
  0x20   : > { %v86_v2 = vld [vmem:[%s85_s21] ss:$8 sm:$0x3] }
  0x21   : > { %v87_v3 = vadd.f32 %v86_v2, %v77_v1 }
  0x23   : > { %100 = vst.msk [vmem:[%s99_s22] ss:$8 sm:$0x3] %vm90_vm0, %v87_v3 }
  0x24   :  { %114 = dma.vmem_to_hbm [thread:$0]  %s107_s26, 8192, %s109_s0, [#allocation7], %s275_s29, %s275_s29, %s276_s30  }
  0x25   :  { %266 = dma.done.wait [#allocation7], 8192  }
  0x26   :  { %267 = vsyncadd [#allocation7], 4294959104 }
  0x27   :  { %119 = vsyncpa [#allocation6], 1 }
  0x28   :  { %120 = vsyncpa [#allocation9], 1 }
  0x29   :  { %121 = vsyncpa [#allocation7], 1 }

</bundles_post_ra>
